<compile_context>
chip_gen: v6e
topology: v6e:2x2x1
jax: 0.10.0
libtpu: 0.0.40
codegen_flags: <defaults>
</compile_context>

<pallas_src>
import jax
import jax.numpy as jnp
from jax.experimental import pallas as pl
from jax.experimental.pallas import tpu as pltpu

BN_EPS = 1e-5


# ----------------------------------------------------------------------------- kernels
def sage_conv_kernel(a_ref, invdeg_ref, xfull_ref, xblk_ref, wl_ref, wr_ref, b_ref, h_ref):
    """relu(SAGEConv(x)) for one TILE_M row block of nodes.

    a_ref      [TILE_M, Npad] bf16  edge-count adjacency row block (exact integers)
    invdeg_ref [TILE_M, 1]    f32   1/deg (mean normalization, kept full precision)
    xfull_ref  [Npad, Fin]    bf16  all node features (resident)
    xblk_ref   [TILE_M, Fin]  bf16  this row block's own features (root term)
    wl_ref/wr_ref             bf16  lin_l / lin_r weights, b_ref f32 lin_l bias
    h_ref      [TILE_M, H]    f32   output = relu(SAGEConv(...))
    """
    # Mean aggregation: bf16 MXU matmul, f32 accumulate, f32 1/deg scaling on the VPU.
    agg = jnp.dot(a_ref[...], xfull_ref[...], preferred_element_type=jnp.float32)
    agg = (agg * invdeg_ref[...]).astype(jnp.bfloat16)
    # lin_l(agg) + lin_r(x) + bias.  (A lane-concat fusion of the two projections was
    # considered; these projections are negligible next to the [TILE_M, Npad]
    # aggregation matmul, so they stay as two plain MXU dots.)
    h = (jnp.dot(agg, wl_ref[...], preferred_element_type=jnp.float32)
         + jnp.dot(xblk_ref[...], wr_ref[...], preferred_element_type=jnp.float32)
         + b_ref[...])
    h_ref[...] = jnp.maximum(h, 0.0)


def _bn_relu(z, gamma, beta):
    # BatchNorm1d in training mode (batch mean, biased variance) + ReLU, all f32.
    m = jnp.mean(z, axis=0, keepdims=True)
    v = jnp.mean((z - m) * (z - m), axis=0, keepdims=True)
    return jnp.maximum((z - m) * jax.lax.rsqrt(v + BN_EPS) * gamma + beta, 0.0)


def mlp_head_kernel(h_ref,
                    w1_ref, b1_ref, g1_ref, be1_ref,
                    w2_ref, b2_ref, g2_ref, be2_ref,
                    w3_ref, b3_ref,
                    out_ref):
    """fc head over the whole batch (BatchNorm reduces over all N rows)."""
    z = jnp.dot(h_ref[...], w1_ref[...], preferred_element_type=jnp.float32) + b1_ref[...]
    z = _bn_relu(z, g1_ref[...], be1_ref[...])
    z = jnp.dot(z.astype(jnp.bfloat16), w2_ref[...],
                preferred_element_type=jnp.float32) + b2_ref[...]
    z = _bn_relu(z, g2_ref[...], be2_ref[...])
    # Linear(hidden2 -> 1): VPU mul + lane reduction (an MXU pass would waste 127/128 lanes).
    out_ref[...] = jnp.sum(z * w3_ref[...], axis=-1, keepdims=True) + b3_ref[...]


# ----------------------------------------------------------------------------- wrappers
def _round_up(v, m):
    return ((v + m - 1) // m) * m


def _choose_tiling(n):
    """Row-block tile (multiple of 8, target 256 ~ MXU-native) and padded node count."""
    if n <= 256:
        t = _round_up(max(n, 8), 8)
        return t, t
    tile = 256
    # keep the double-buffered bf16 A row block under ~12 MiB
    while tile > 8 and 2 * tile * _round_up(n, tile) * 2 > 12 * (1 << 20):
        tile //= 2
    return tile, _round_up(n, tile)


def _sage_conv(a_bf16, inv_deg, x_bf16, wl, wr, bias, tile_m):
    n_pad = a_bf16.shape[0]
    fin = x_bf16.shape[1]
    hidden = wl.shape[1]
    vmem = (4 * tile_m * n_pad * 2                 # A row block, double-buffered, bf16
            + 2 * n_pad * fin * 2                  # resident node features
            + 2 * tile_m * fin * 2                 # root-term row block
            + 4 * fin * hidden * 2 + hidden * 4    # weights + bias
            + 4 * tile_m * hidden * 4              # output block
            + 8 * tile_m * max(fin, hidden) * 4)   # intermediates / margin
    vmem = int(min(max(vmem, 4 << 20), 64 << 20))
    return pl.pallas_call(
        sage_conv_kernel,
        out_shape=jax.ShapeDtypeStruct((n_pad, hidden), jnp.float32),
        grid=(n_pad // tile_m,),
        in_specs=[
            pl.BlockSpec((tile_m, n_pad), lambda i: (i, 0)),   # A row block
            pl.BlockSpec((tile_m, 1), lambda i: (i, 0)),       # 1/deg row block
            pl.BlockSpec((n_pad, fin), lambda i: (0, 0)),      # all node features
            pl.BlockSpec((tile_m, fin), lambda i: (i, 0)),     # this block's features
            pl.BlockSpec((fin, hidden), lambda i: (0, 0)),     # W_l
            pl.BlockSpec((fin, hidden), lambda i: (0, 0)),     # W_r
            pl.BlockSpec((1, hidden), lambda i: (0, 0)),       # bias
        ],
        out_specs=pl.BlockSpec((tile_m, hidden), lambda i: (i, 0)),
        compiler_params=pltpu.CompilerParams(
            dimension_semantics=("parallel",),
            vmem_limit_bytes=vmem),
    )(a_bf16, inv_deg, x_bf16, x_bf16, wl, wr, bias)


def _mlp_head(h_bf16, params):
    n, hid = h_bf16.shape
    h1d = params["w1"].shape[1]
    h2d = params["w2"].shape[1]
    vmem = int(min(max(n * (hid * 2 + 6 * h1d * 4 + 6 * h2d * 4 + 16) + (2 << 20),
                       4 << 20), 64 << 20))
    vm = pl.BlockSpec(memory_space=pltpu.MemorySpace.VMEM)
    args = (h_bf16,
            params["w1"].astype(jnp.bfloat16), params["b1"], params["g1"], params["be1"],
            params["w2"].astype(jnp.bfloat16), params["b2"], params["g2"], params["be2"],
            params["w3"].T,            # [1, hidden2] row for the VPU reduction (kept f32)
            params["b3"])
    return pl.pallas_call(
        mlp_head_kernel,
        out_shape=jax.ShapeDtypeStruct((n, 1), jnp.float32),
        in_specs=[vm] * len(args),
        out_specs=vm,
        compiler_params=pltpu.CompilerParams(vmem_limit_bytes=vmem),
    )(*args)


@jax.jit
def sage_onehot_mlp(x, edge_index, params):
    # glue: flatten node features, build dense edge-count adjacency + 1/deg.
    # TODO(synk): for large/sparse real graphs, replace the dense A matmul with a CSR
    # scalar-prefetch gather / segment-sum aggregation instead of O(N^2) dense aggregation.
    x = x.reshape(x.shape[0], -1).astype(jnp.float32)
    n = x.shape[0]
    tile_m, n_pad = _choose_tiling(n)

    src, dst = edge_index[0], edge_index[1]
    a = jnp.zeros((n_pad, n_pad), jnp.float32).at[dst, src].add(1.0)
    deg = jnp.sum(a, axis=1, keepdims=True)
    inv_deg = 1.0 / jnp.maximum(deg, 1.0)          # f32 mean normalization
    a_bf16 = a.astype(jnp.bfloat16)                # small integer counts: exact in bf16

    x_pad = jnp.pad(x, ((0, n_pad - n), (0, 0))).astype(jnp.bfloat16)

    wl1 = params["wl1"].astype(jnp.bfloat16)
    wr1 = params["wr1"].astype(jnp.bfloat16)
    wl2 = params["wl2"].astype(jnp.bfloat16)
    wr2 = params["wr2"].astype(jnp.bfloat16)

    h1 = _sage_conv(a_bf16, inv_deg, x_pad, wl1, wr1, params["bl1"], tile_m)
    h2 = _sage_conv(a_bf16, inv_deg, h1.astype(jnp.bfloat16), wl2, wr2,
                    params["bl2"], tile_m)

    # head runs on the real N rows only, so BN statistics ignore padded rows
    out = _mlp_head(h2[:n].astype(jnp.bfloat16), params)
    return out[:, 0], [h1[:n], h2[:n]]


def init_params(key, in_channels, hidden_channels, hidden1=128, hidden2=64):
    """Deterministic params. Linear weights stored [in, out]; xavier weights, zero bias."""
    def xavier(k, fan_in, fan_out):
        bound = jnp.sqrt(6.0 / (fan_in + fan_out))
        return jax.random.uniform(k, (fan_in, fan_out), jnp.float32, -bound, bound)

    ks = jax.random.split(key, 7)
    return {
        # SAGEConv 1: lin_l (neighbors, with bias), lin_r (root, no bias)
        "wl1": xavier(ks[0], in_channels, hidden_channels),
        "bl1": jnp.zeros((1, hidden_channels), jnp.float32),
        "wr1": xavier(ks[1], in_channels, hidden_channels),
        # SAGEConv 2
        "wl2": xavier(ks[2], hidden_channels, hidden_channels),
        "bl2": jnp.zeros((1, hidden_channels), jnp.float32),
        "wr2": xavier(ks[3], hidden_channels, hidden_channels),
        # fc: Linear(hidden,128) -> BN -> ReLU -> Linear(128,64) -> BN -> ReLU -> Linear(64,1)
        "w1": xavier(ks[4], hidden_channels, hidden1),
        "b1": jnp.zeros((1, hidden1), jnp.float32),
        "g1": jnp.ones((1, hidden1), jnp.float32),
        "be1": jnp.zeros((1, hidden1), jnp.float32),
        "w2": xavier(ks[5], hidden1, hidden2),
        "b2": jnp.zeros((1, hidden2), jnp.float32),
        "g2": jnp.ones((1, hidden2), jnp.float32),
        "be2": jnp.zeros((1, hidden2), jnp.float32),
        "w3": xavier(ks[6], hidden2, 1),
        "b3": jnp.zeros((1, 1), jnp.float32),
    }


if __name__ == "__main__":
    key = jax.random.PRNGKey(0)
    k_x, k_e, k_p = jax.random.split(key, 3)

    N, IN_CH, HIDDEN, E = 64, 16, 32, 256

    x = jax.random.normal(k_x, (N, IN_CH), jnp.float32)
    edge_index = jax.random.randint(k_e, (2, E), 0, N, dtype=jnp.int32)
    params = init_params(k_p, IN_CH, HIDDEN)

    out, embeddings = sage_onehot_mlp(x, edge_index, params)
    jax.block_until_ready(out)
    jax.block_until_ready(embeddings)

    assert out.shape == (N,)
    assert embeddings[0].shape == (N, HIDDEN) and embeddings[1].shape == (N, HIDDEN)
    assert bool(jnp.all(jnp.isfinite(out)))
    print("KERNEL_OK")
</pallas_src>

<mosaic_0001>
module attributes {stable_mosaic.version = 11 : i64} {
  func.func private @main(%arg0: i32) attributes {dimension_semantics = [#tpu.dimension_semantics<core_parallel>], iteration_bounds = array<i64: 2>, tpu.core_type = #tpu.core_type<sc_scalar_subcore>, window_params = []} {
    return
  }
}

module attributes {stable_mosaic.version = 11 : i64} {
  func.func private @main(%arg0: i32) attributes {dimension_semantics = [#tpu.dimension_semantics<core_parallel>], iteration_bounds = array<i64: 2>, tpu.core_type = #tpu.core_type<sc_scalar_subcore>, window_params = []} {
    return
  }
}

module attributes {stable_mosaic.version = 11 : i64} {
  func.func @sage_conv_kernel(%arg0: i32, %arg1: memref<64x64xbf16, #tpu.memory_space<vmem>>, %arg2: memref<64x1xf32, #tpu.memory_space<vmem>>, %arg3: memref<64x16xbf16, #tpu.memory_space<vmem>>, %arg4: memref<64x16xbf16, #tpu.memory_space<vmem>>, %arg5: memref<16x32xbf16, #tpu.memory_space<vmem>>, %arg6: memref<16x32xbf16, #tpu.memory_space<vmem>>, %arg7: memref<1x32xf32, #tpu.memory_space<vmem>>, %arg8: memref<64x32xf32, #tpu.memory_space<vmem>>) attributes {dimension_semantics = [#tpu.dimension_semantics<parallel>], iteration_bounds = array<i64: 1>, scalar_prefetch = 0 : i64, scratch_operands = 0 : i64, tpu.core_type = #tpu.core_type<tc>, window_params = [{transform_indices = @transform_0, window_bounds = array<i64: 64, 64>}, {transform_indices = @transform_1, window_bounds = array<i64: 64, 1>}, {pipeline_mode = #tpu.pipeline_mode<synchronous>, transform_indices = @transform_2, window_bounds = array<i64: 64, 16>}, {transform_indices = @transform_3, window_bounds = array<i64: 64, 16>}, {pipeline_mode = #tpu.pipeline_mode<synchronous>, transform_indices = @transform_4, window_bounds = array<i64: 16, 32>}, {pipeline_mode = #tpu.pipeline_mode<synchronous>, transform_indices = @transform_5, window_bounds = array<i64: 16, 32>}, {pipeline_mode = #tpu.pipeline_mode<synchronous>, transform_indices = @transform_6, window_bounds = array<i64: 1, 32>}, {transform_indices = @transform_7, window_bounds = array<i64: 64, 32>}]} {
    %c0 = arith.constant 0 : index
    %c0_0 = arith.constant 0 : index
    %0 = vector.load %arg1[%c0, %c0_0] : memref<64x64xbf16, #tpu.memory_space<vmem>>, vector<64x64xbf16>
    %c0_1 = arith.constant 0 : index
    %c0_2 = arith.constant 0 : index
    %1 = vector.load %arg3[%c0_1, %c0_2] : memref<64x16xbf16, #tpu.memory_space<vmem>>, vector<64x16xbf16>
    %cst = arith.constant dense<0.000000e+00> : vector<64x16xf32>
    %2 = tpu.matmul %0, %1, %cst {dimension_numbers = #tpu.dot_dimension_numbers<[1], [0], [0], [1], [0, 0, 1, 1], [], []>} : vector<64x64xbf16>, vector<64x16xbf16>, vector<64x16xf32> -> vector<64x16xf32>
    %c0_3 = arith.constant 0 : index
    %c0_4 = arith.constant 0 : index
    %3 = vector.load %arg2[%c0_3, %c0_4] : memref<64x1xf32, #tpu.memory_space<vmem>>, vector<64x1xf32>
    %4 = vector.broadcast %3 : vector<64x1xf32> to vector<64x16xf32>
    %5 = arith.mulf %2, %4 : vector<64x16xf32>
    %6 = arith.truncf %5 : vector<64x16xf32> to vector<64x16xbf16>
    %c0_5 = arith.constant 0 : index
    %c0_6 = arith.constant 0 : index
    %7 = vector.load %arg5[%c0_5, %c0_6] : memref<16x32xbf16, #tpu.memory_space<vmem>>, vector<16x32xbf16>
    %cst_7 = arith.constant dense<0.000000e+00> : vector<64x32xf32>
    %8 = tpu.matmul %6, %7, %cst_7 {dimension_numbers = #tpu.dot_dimension_numbers<[1], [0], [0], [1], [0, 0, 1, 1], [], []>} : vector<64x16xbf16>, vector<16x32xbf16>, vector<64x32xf32> -> vector<64x32xf32>
    %c0_8 = arith.constant 0 : index
    %c0_9 = arith.constant 0 : index
    %9 = vector.load %arg4[%c0_8, %c0_9] : memref<64x16xbf16, #tpu.memory_space<vmem>>, vector<64x16xbf16>
    %c0_10 = arith.constant 0 : index
    %c0_11 = arith.constant 0 : index
    %10 = vector.load %arg6[%c0_10, %c0_11] : memref<16x32xbf16, #tpu.memory_space<vmem>>, vector<16x32xbf16>
    %cst_12 = arith.constant dense<0.000000e+00> : vector<64x32xf32>
    %11 = tpu.matmul %9, %10, %cst_12 {dimension_numbers = #tpu.dot_dimension_numbers<[1], [0], [0], [1], [0, 0, 1, 1], [], []>} : vector<64x16xbf16>, vector<16x32xbf16>, vector<64x32xf32> -> vector<64x32xf32>
    %12 = arith.addf %8, %11 : vector<64x32xf32>
    %c0_13 = arith.constant 0 : index
    %c0_14 = arith.constant 0 : index
    %13 = vector.load %arg7[%c0_13, %c0_14] : memref<1x32xf32, #tpu.memory_space<vmem>>, vector<1x32xf32>
    %14 = vector.broadcast %13 : vector<1x32xf32> to vector<64x32xf32>
    %15 = arith.addf %12, %14 : vector<64x32xf32>
    %cst_15 = arith.constant 0.000000e+00 : f32
    %16 = vector.broadcast %cst_15 : f32 to vector<64x32xf32>
    %17 = arith.maximumf %15, %16 : vector<64x32xf32>
    %c0_16 = arith.constant 0 : index
    %c0_17 = arith.constant 0 : index
    %18 = vector.load %arg8[%c0_16, %c0_17] : memref<64x32xf32, #tpu.memory_space<vmem>>, vector<64x32xf32>
    tpu.vector_store %arg8[%c0_16, %c0_17], %17 {strides = array<i32>} : memref<64x32xf32, #tpu.memory_space<vmem>>, vector<64x32xf32>,
    return
  }
  func.func @transform_0(%arg0: i32) -> (i32, i32) {
    %c0_i32 = arith.constant 0 : i32
    %c0_i32_0 = arith.constant 0 : i32
    return %arg0, %c0_i32 : i32, i32
  }
  func.func @transform_1(%arg0: i32) -> (i32, i32) {
    %c0_i32 = arith.constant 0 : i32
    %c0_i32_0 = arith.constant 0 : i32
    return %arg0, %c0_i32 : i32, i32
  }
  func.func @transform_2(%arg0: i32) -> (i32, i32) {
    %c0_i32 = arith.constant 0 : i32
    %c0_i32_0 = arith.constant 0 : i32
    %c0_i32_1 = arith.constant 0 : i32
    return %c0_i32, %c0_i32_0 : i32, i32
  }
  func.func @transform_3(%arg0: i32) -> (i32, i32) {
    %c0_i32 = arith.constant 0 : i32
    %c0_i32_0 = arith.constant 0 : i32
    return %arg0, %c0_i32 : i32, i32
  }
  func.func @transform_4(%arg0: i32) -> (i32, i32) {
    %c0_i32 = arith.constant 0 : i32
    %c0_i32_0 = arith.constant 0 : i32
    %c0_i32_1 = arith.constant 0 : i32
    return %c0_i32, %c0_i32_0 : i32, i32
  }
  func.func @transform_5(%arg0: i32) -> (i32, i32) {
    %c0_i32 = arith.constant 0 : i32
    %c0_i32_0 = arith.constant 0 : i32
    %c0_i32_1 = arith.constant 0 : i32
    return %c0_i32, %c0_i32_0 : i32, i32
  }
  func.func @transform_6(%arg0: i32) -> (i32, i32) {
    %c0_i32 = arith.constant 0 : i32
    %c0_i32_0 = arith.constant 0 : i32
    %c0_i32_1 = arith.constant 0 : i32
    return %c0_i32, %c0_i32_0 : i32, i32
  }
  func.func @transform_7(%arg0: i32) -> (i32, i32) {
    %c0_i32 = arith.constant 0 : i32
    %c0_i32_0 = arith.constant 0 : i32
    return %arg0, %c0_i32 : i32, i32
  }
}

module attributes {stable_mosaic.version = 11 : i64} {
  func.func @mlp_head_kernel(%arg0: memref<64x32xbf16, #tpu.memory_space<vmem>>, %arg1: memref<32x128xbf16, #tpu.memory_space<vmem>>, %arg2: memref<1x128xf32, #tpu.memory_space<vmem>>, %arg3: memref<1x128xf32, #tpu.memory_space<vmem>>, %arg4: memref<1x128xf32, #tpu.memory_space<vmem>>, %arg5: memref<128x64xbf16, #tpu.memory_space<vmem>>, %arg6: memref<1x64xf32, #tpu.memory_space<vmem>>, %arg7: memref<1x64xf32, #tpu.memory_space<vmem>>, %arg8: memref<1x64xf32, #tpu.memory_space<vmem>>, %arg9: memref<1x64xf32, #tpu.memory_space<vmem>>, %arg10: memref<1x1xf32, #tpu.memory_space<vmem>>, %arg11: memref<64x1xf32, #tpu.memory_space<vmem>>) attributes {dimension_semantics = [], scalar_prefetch = 0 : i64, scratch_operands = 0 : i64, tpu.core_type = #tpu.core_type<tc>} {
    %c0 = arith.constant 0 : index
    %c0_0 = arith.constant 0 : index
    %0 = vector.load %arg0[%c0, %c0_0] : memref<64x32xbf16, #tpu.memory_space<vmem>>, vector<64x32xbf16>
    %c0_1 = arith.constant 0 : index
    %c0_2 = arith.constant 0 : index
    %1 = vector.load %arg1[%c0_1, %c0_2] : memref<32x128xbf16, #tpu.memory_space<vmem>>, vector<32x128xbf16>
    %cst = arith.constant dense<0.000000e+00> : vector<64x128xf32>
    %2 = tpu.matmul %0, %1, %cst {dimension_numbers = #tpu.dot_dimension_numbers<[1], [0], [0], [1], [0, 0, 1, 1], [], []>} : vector<64x32xbf16>, vector<32x128xbf16>, vector<64x128xf32> -> vector<64x128xf32>
    %c0_3 = arith.constant 0 : index
    %c0_4 = arith.constant 0 : index
    %3 = vector.load %arg2[%c0_3, %c0_4] : memref<1x128xf32, #tpu.memory_space<vmem>>, vector<1x128xf32>
    %4 = vector.broadcast %3 : vector<1x128xf32> to vector<64x128xf32>
    %5 = arith.addf %2, %4 : vector<64x128xf32>
    %c0_5 = arith.constant 0 : index
    %c0_6 = arith.constant 0 : index
    %6 = vector.load %arg3[%c0_5, %c0_6] : memref<1x128xf32, #tpu.memory_space<vmem>>, vector<1x128xf32>
    %c0_7 = arith.constant 0 : index
    %c0_8 = arith.constant 0 : index
    %7 = vector.load %arg4[%c0_7, %c0_8] : memref<1x128xf32, #tpu.memory_space<vmem>>, vector<1x128xf32>
    %cst_9 = arith.constant dense<0.000000e+00> : vector<128xf32>
    %8 = vector.multi_reduction <add>, %5, %cst_9 [0] : vector<64x128xf32> to vector<128xf32>
    %9 = vector.shape_cast %8 : vector<128xf32> to vector<1x128xf32>
    %cst_10 = arith.constant 6.400000e+01 : f32
    %10 = vector.broadcast %cst_10 : f32 to vector<1x128xf32>
    %11 = arith.divf %9, %10 : vector<1x128xf32>
    %12 = vector.broadcast %11 : vector<1x128xf32> to vector<64x128xf32>
    %13 = arith.subf %5, %12 : vector<64x128xf32>
    %14 = vector.broadcast %11 : vector<1x128xf32> to vector<64x128xf32>
    %15 = arith.subf %5, %14 : vector<64x128xf32>
    %16 = arith.mulf %13, %15 : vector<64x128xf32>
    %cst_11 = arith.constant dense<0.000000e+00> : vector<128xf32>
    %17 = vector.multi_reduction <add>, %16, %cst_11 [0] : vector<64x128xf32> to vector<128xf32>
    %18 = vector.shape_cast %17 : vector<128xf32> to vector<1x128xf32>
    %cst_12 = arith.constant 6.400000e+01 : f32
    %19 = vector.broadcast %cst_12 : f32 to vector<1x128xf32>
    %20 = arith.divf %18, %19 : vector<1x128xf32>
    %21 = vector.broadcast %11 : vector<1x128xf32> to vector<64x128xf32>
    %22 = arith.subf %5, %21 : vector<64x128xf32>
    %cst_13 = arith.constant 9.99999974E-6 : f32
    %23 = vector.broadcast %cst_13 : f32 to vector<1x128xf32>
    %24 = arith.addf %20, %23 : vector<1x128xf32>
    %25 = math.rsqrt %24 : vector<1x128xf32>
    %26 = vector.broadcast %25 : vector<1x128xf32> to vector<64x128xf32>
    %27 = arith.mulf %22, %26 : vector<64x128xf32>
    %28 = vector.broadcast %6 : vector<1x128xf32> to vector<64x128xf32>
    %29 = arith.mulf %27, %28 : vector<64x128xf32>
    %30 = vector.broadcast %7 : vector<1x128xf32> to vector<64x128xf32>
    %31 = arith.addf %29, %30 : vector<64x128xf32>
    %cst_14 = arith.constant 0.000000e+00 : f32
    %32 = vector.broadcast %cst_14 : f32 to vector<64x128xf32>
    %33 = arith.maximumf %31, %32 : vector<64x128xf32>
    %34 = arith.truncf %33 : vector<64x128xf32> to vector<64x128xbf16>
    %c0_15 = arith.constant 0 : index
    %c0_16 = arith.constant 0 : index
    %35 = vector.load %arg5[%c0_15, %c0_16] : memref<128x64xbf16, #tpu.memory_space<vmem>>, vector<128x64xbf16>
    %cst_17 = arith.constant dense<0.000000e+00> : vector<64x64xf32>
    %36 = tpu.matmul %34, %35, %cst_17 {dimension_numbers = #tpu.dot_dimension_numbers<[1], [0], [0], [1], [0, 0, 1, 1], [], []>} : vector<64x128xbf16>, vector<128x64xbf16>, vector<64x64xf32> -> vector<64x64xf32>
    %c0_18 = arith.constant 0 : index
    %c0_19 = arith.constant 0 : index
    %37 = vector.load %arg6[%c0_18, %c0_19] : memref<1x64xf32, #tpu.memory_space<vmem>>, vector<1x64xf32>
    %38 = vector.broadcast %37 : vector<1x64xf32> to vector<64x64xf32>
    %39 = arith.addf %36, %38 : vector<64x64xf32>
    %c0_20 = arith.constant 0 : index
    %c0_21 = arith.constant 0 : index
    %40 = vector.load %arg7[%c0_20, %c0_21] : memref<1x64xf32, #tpu.memory_space<vmem>>, vector<1x64xf32>
    %c0_22 = arith.constant 0 : index
    %c0_23 = arith.constant 0 : index
    %41 = vector.load %arg8[%c0_22, %c0_23] : memref<1x64xf32, #tpu.memory_space<vmem>>, vector<1x64xf32>
    %cst_24 = arith.constant dense<0.000000e+00> : vector<64xf32>
    %42 = vector.multi_reduction <add>, %39, %cst_24 [0] : vector<64x64xf32> to vector<64xf32>
    %43 = vector.shape_cast %42 : vector<64xf32> to vector<1x64xf32>
    %cst_25 = arith.constant 6.400000e+01 : f32
    %44 = vector.broadcast %cst_25 : f32 to vector<1x64xf32>
    %45 = arith.divf %43, %44 : vector<1x64xf32>
    %46 = vector.broadcast %45 : vector<1x64xf32> to vector<64x64xf32>
    %47 = arith.subf %39, %46 : vector<64x64xf32>
    %48 = vector.broadcast %45 : vector<1x64xf32> to vector<64x64xf32>
    %49 = arith.subf %39, %48 : vector<64x64xf32>
    %50 = arith.mulf %47, %49 : vector<64x64xf32>
    %cst_26 = arith.constant dense<0.000000e+00> : vector<64xf32>
    %51 = vector.multi_reduction <add>, %50, %cst_26 [0] : vector<64x64xf32> to vector<64xf32>
    %52 = vector.shape_cast %51 : vector<64xf32> to vector<1x64xf32>
    %cst_27 = arith.constant 6.400000e+01 : f32
    %53 = vector.broadcast %cst_27 : f32 to vector<1x64xf32>
    %54 = arith.divf %52, %53 : vector<1x64xf32>
    %55 = vector.broadcast %45 : vector<1x64xf32> to vector<64x64xf32>
    %56 = arith.subf %39, %55 : vector<64x64xf32>
    %cst_28 = arith.constant 9.99999974E-6 : f32
    %57 = vector.broadcast %cst_28 : f32 to vector<1x64xf32>
    %58 = arith.addf %54, %57 : vector<1x64xf32>
    %59 = math.rsqrt %58 : vector<1x64xf32>
    %60 = vector.broadcast %59 : vector<1x64xf32> to vector<64x64xf32>
    %61 = arith.mulf %56, %60 : vector<64x64xf32>
    %62 = vector.broadcast %40 : vector<1x64xf32> to vector<64x64xf32>
    %63 = arith.mulf %61, %62 : vector<64x64xf32>
    %64 = vector.broadcast %41 : vector<1x64xf32> to vector<64x64xf32>
    %65 = arith.addf %63, %64 : vector<64x64xf32>
    %cst_29 = arith.constant 0.000000e+00 : f32
    %66 = vector.broadcast %cst_29 : f32 to vector<64x64xf32>
    %67 = arith.maximumf %65, %66 : vector<64x64xf32>
    %c0_30 = arith.constant 0 : index
    %c0_31 = arith.constant 0 : index
    %68 = vector.load %arg9[%c0_30, %c0_31] : memref<1x64xf32, #tpu.memory_space<vmem>>, vector<1x64xf32>
    %69 = vector.broadcast %68 : vector<1x64xf32> to vector<64x64xf32>
    %70 = arith.mulf %67, %69 : vector<64x64xf32>
    %cst_32 = arith.constant dense<0.000000e+00> : vector<64xf32>
    %71 = vector.multi_reduction <add>, %70, %cst_32 [1] : vector<64x64xf32> to vector<64xf32>
    %72 = vector.shape_cast %71 : vector<64xf32> to vector<64x1xf32>
    %c0_33 = arith.constant 0 : index
    %c0_34 = arith.constant 0 : index
    %73 = vector.load %arg10[%c0_33, %c0_34] : memref<1x1xf32, #tpu.memory_space<vmem>>, vector<1x1xf32>
    %74 = vector.broadcast %73 : vector<1x1xf32> to vector<64x1xf32>
    %75 = arith.addf %72, %74 : vector<64x1xf32>
    %c0_35 = arith.constant 0 : index
    %c0_36 = arith.constant 0 : index
    %76 = vector.load %arg11[%c0_35, %c0_36] : memref<64x1xf32, #tpu.memory_space<vmem>>, vector<64x1xf32>
    tpu.vector_store %arg11[%c0_35, %c0_36], %75 {strides = array<i32>} : memref<64x1xf32, #tpu.memory_space<vmem>>, vector<64x1xf32>,
    return
  }
}

module attributes {stable_mosaic.version = 11 : i64} {
  func.func @sage_conv_kernel(%arg0: i32, %arg1: memref<64x64xbf16, #tpu.memory_space<vmem>>, %arg2: memref<64x1xf32, #tpu.memory_space<vmem>>, %arg3: memref<64x32xbf16, #tpu.memory_space<vmem>>, %arg4: memref<64x32xbf16, #tpu.memory_space<vmem>>, %arg5: memref<32x32xbf16, #tpu.memory_space<vmem>>, %arg6: memref<32x32xbf16, #tpu.memory_space<vmem>>, %arg7: memref<1x32xf32, #tpu.memory_space<vmem>>, %arg8: memref<64x32xf32, #tpu.memory_space<vmem>>) attributes {dimension_semantics = [#tpu.dimension_semantics<parallel>], iteration_bounds = array<i64: 1>, scalar_prefetch = 0 : i64, scratch_operands = 0 : i64, tpu.core_type = #tpu.core_type<tc>, window_params = [{transform_indices = @transform_0, window_bounds = array<i64: 64, 64>}, {transform_indices = @transform_1, window_bounds = array<i64: 64, 1>}, {pipeline_mode = #tpu.pipeline_mode<synchronous>, transform_indices = @transform_2, window_bounds = array<i64: 64, 32>}, {transform_indices = @transform_3, window_bounds = array<i64: 64, 32>}, {pipeline_mode = #tpu.pipeline_mode<synchronous>, transform_indices = @transform_4, window_bounds = array<i64: 32, 32>}, {pipeline_mode = #tpu.pipeline_mode<synchronous>, transform_indices = @transform_5, window_bounds = array<i64: 32, 32>}, {pipeline_mode = #tpu.pipeline_mode<synchronous>, transform_indices = @transform_6, window_bounds = array<i64: 1, 32>}, {transform_indices = @transform_7, window_bounds = array<i64: 64, 32>}]} {
    %c0 = arith.constant 0 : index
    %c0_0 = arith.constant 0 : index
    %0 = vector.load %arg1[%c0, %c0_0] : memref<64x64xbf16, #tpu.memory_space<vmem>>, vector<64x64xbf16>
    %c0_1 = arith.constant 0 : index
    %c0_2 = arith.constant 0 : index
    %1 = vector.load %arg3[%c0_1, %c0_2] : memref<64x32xbf16, #tpu.memory_space<vmem>>, vector<64x32xbf16>
    %cst = arith.constant dense<0.000000e+00> : vector<64x32xf32>
    %2 = tpu.matmul %0, %1, %cst {dimension_numbers = #tpu.dot_dimension_numbers<[1], [0], [0], [1], [0, 0, 1, 1], [], []>} : vector<64x64xbf16>, vector<64x32xbf16>, vector<64x32xf32> -> vector<64x32xf32>
    %c0_3 = arith.constant 0 : index
    %c0_4 = arith.constant 0 : index
    %3 = vector.load %arg2[%c0_3, %c0_4] : memref<64x1xf32, #tpu.memory_space<vmem>>, vector<64x1xf32>
    %4 = vector.broadcast %3 : vector<64x1xf32> to vector<64x32xf32>
    %5 = arith.mulf %2, %4 : vector<64x32xf32>
    %6 = arith.truncf %5 : vector<64x32xf32> to vector<64x32xbf16>
    %c0_5 = arith.constant 0 : index
    %c0_6 = arith.constant 0 : index
    %7 = vector.load %arg5[%c0_5, %c0_6] : memref<32x32xbf16, #tpu.memory_space<vmem>>, vector<32x32xbf16>
    %cst_7 = arith.constant dense<0.000000e+00> : vector<64x32xf32>
    %8 = tpu.matmul %6, %7, %cst_7 {dimension_numbers = #tpu.dot_dimension_numbers<[1], [0], [0], [1], [0, 0, 1, 1], [], []>} : vector<64x32xbf16>, vector<32x32xbf16>, vector<64x32xf32> -> vector<64x32xf32>
    %c0_8 = arith.constant 0 : index
    %c0_9 = arith.constant 0 : index
    %9 = vector.load %arg4[%c0_8, %c0_9] : memref<64x32xbf16, #tpu.memory_space<vmem>>, vector<64x32xbf16>
    %c0_10 = arith.constant 0 : index
    %c0_11 = arith.constant 0 : index
    %10 = vector.load %arg6[%c0_10, %c0_11] : memref<32x32xbf16, #tpu.memory_space<vmem>>, vector<32x32xbf16>
    %cst_12 = arith.constant dense<0.000000e+00> : vector<64x32xf32>
    %11 = tpu.matmul %9, %10, %cst_12 {dimension_numbers = #tpu.dot_dimension_numbers<[1], [0], [0], [1], [0, 0, 1, 1], [], []>} : vector<64x32xbf16>, vector<32x32xbf16>, vector<64x32xf32> -> vector<64x32xf32>
    %12 = arith.addf %8, %11 : vector<64x32xf32>
    %c0_13 = arith.constant 0 : index
    %c0_14 = arith.constant 0 : index
    %13 = vector.load %arg7[%c0_13, %c0_14] : memref<1x32xf32, #tpu.memory_space<vmem>>, vector<1x32xf32>
    %14 = vector.broadcast %13 : vector<1x32xf32> to vector<64x32xf32>
    %15 = arith.addf %12, %14 : vector<64x32xf32>
    %cst_15 = arith.constant 0.000000e+00 : f32
    %16 = vector.broadcast %cst_15 : f32 to vector<64x32xf32>
    %17 = arith.maximumf %15, %16 : vector<64x32xf32>
    %c0_16 = arith.constant 0 : index
    %c0_17 = arith.constant 0 : index
    %18 = vector.load %arg8[%c0_16, %c0_17] : memref<64x32xf32, #tpu.memory_space<vmem>>, vector<64x32xf32>
    tpu.vector_store %arg8[%c0_16, %c0_17], %17 {strides = array<i32>} : memref<64x32xf32, #tpu.memory_space<vmem>>, vector<64x32xf32>,
    return
  }
  func.func @transform_0(%arg0: i32) -> (i32, i32) {
    %c0_i32 = arith.constant 0 : i32
    %c0_i32_0 = arith.constant 0 : i32
    return %arg0, %c0_i32 : i32, i32
  }
  func.func @transform_1(%arg0: i32) -> (i32, i32) {
    %c0_i32 = arith.constant 0 : i32
    %c0_i32_0 = arith.constant 0 : i32
    return %arg0, %c0_i32 : i32, i32
  }
  func.func @transform_2(%arg0: i32) -> (i32, i32) {
    %c0_i32 = arith.constant 0 : i32
    %c0_i32_0 = arith.constant 0 : i32
    %c0_i32_1 = arith.constant 0 : i32
    return %c0_i32, %c0_i32_0 : i32, i32
  }
  func.func @transform_3(%arg0: i32) -> (i32, i32) {
    %c0_i32 = arith.constant 0 : i32
    %c0_i32_0 = arith.constant 0 : i32
    return %arg0, %c0_i32 : i32, i32
  }
  func.func @transform_4(%arg0: i32) -> (i32, i32) {
    %c0_i32 = arith.constant 0 : i32
    %c0_i32_0 = arith.constant 0 : i32
    %c0_i32_1 = arith.constant 0 : i32
    return %c0_i32, %c0_i32_0 : i32, i32
  }
  func.func @transform_5(%arg0: i32) -> (i32, i32) {
    %c0_i32 = arith.constant 0 : i32
    %c0_i32_0 = arith.constant 0 : i32
    %c0_i32_1 = arith.constant 0 : i32
    return %c0_i32, %c0_i32_0 : i32, i32
  }
  func.func @transform_6(%arg0: i32) -> (i32, i32) {
    %c0_i32 = arith.constant 0 : i32
    %c0_i32_0 = arith.constant 0 : i32
    %c0_i32_1 = arith.constant 0 : i32
    return %c0_i32, %c0_i32_0 : i32, i32
  }
  func.func @transform_7(%arg0: i32) -> (i32, i32) {
    %c0_i32 = arith.constant 0 : i32
    %c0_i32_0 = arith.constant 0 : i32
    return %arg0, %c0_i32 : i32, i32
  }
}

</mosaic_0001>

<bundles_post_ra>
// kernel: sage_onehot_mlp.3
= control target key start
LH: loop header
LB: loop body
LE: loop exit
PB: predicated region body
PF: predicated region fallthrough
CT: control target
= control target key end

     0   :  { %v558_v1 = vmov 0   ;;  %vm87_vm0 = vcmask 523264   ;;  %vm263_vm1 = vcmask 130048   ;;  %vm447_vm2 = vcmask 261120   ;;  %s712_s2 = inlined_call_operand.vmem [shape: bf16[64,16], index: 2, kind: input, shape index: {}, may-alias: {2,3}]   ;;  %s713_s0 = inlined_call_operand.vmem [shape: bf16[64,64], index: 0, kind: input, shape index: {}]   ;;  %s714_s1 = inlined_call_operand.vmem [shape: f32[64,1], index: 1, kind: input, shape index: {}]   ;;  %s715_s5 = inlined_call_operand.vmem [shape: bf16[16,32], index: 5, kind: input, shape index: {}]   ;;  %s716_s3 = inlined_call_operand.vmem [shape: bf16[64,16], index: 3, kind: input, shape index: {}, may-alias: {2,3}]   ;;  %s717_s4 = inlined_call_operand.vmem [shape: bf16[16,32], index: 4, kind: input, shape index: {}]   ;;  %s718_s6 = inlined_call_operand.vmem [shape: f32[1,32], index: 6, kind: input, shape index: {}]   ;;  %s719_s7 = inlined_call_operand.vmem [shape: f32[64,32], index: 7, kind: output, shape index: {}]  }
   0x1   :  { %v544_v0 = vld [vmem:[%s712_s2 + $0x18] sm:$0xff]   ;;  %542 = vset.pattern.permute.xlu0 %v558_v1  ;;  %543 = vset.pattern.permute.xlu1 %v558_v1  ;;  %v545_v2 = vld [vmem:[%s712_s2 + $0x10] sm:$0xff]   ;;  %v546_v3 = vld [vmem:[%s712_s2 + $0x8] sm:$0xff]  }
   0x2   :  { %505 = vmatprep.subr.bf16.mxu0 %v544_v0  ;;  %v548_v4 = vld [vmem:[%s713_s0] sm:$0xff]   ;;  %v167_v7 = vld [vmem:[%s714_s1 + $0x10] sm:$0xff]  ;;  %v166_v8 = vld [vmem:[%s714_s1 + $0x8] sm:$0xff] }
   0x3   :  { %506 = vmatpush3.bf16.msra.mxu0 %v544_v0  ;;  %513 = vmatprep.mubr.msk.bf16.mxu0 %vm87_vm0, %v548_v4  ;;  %v547_v5 = vld [vmem:[%s712_s2] sm:$0xff]   ;;  %v168_v9 = vld [vmem:[%s714_s1 + $0x18] sm:$0xff]  ;;  %v549_v11 = vld [vmem:[%s713_s0 + $0x8] sm:$0xff]  }
   0x4   :  { %507 = vmatprep.subr.bf16.mxu0 %v545_v2  ;;  %v165_v6 = vld [vmem:[%s714_s1] sm:$0xff]  ;;  %185 = vperm.xlu1 %543, %v167_v7   ;;  %v170_v13 = vld [vmem:[%s714_s1 + $0x28] sm:$0xff]  ;;  %v550_v17 = vld [vmem:[%s713_s0 + $0x10] sm:$0xff]  }
   0x5   :  { %175 = vperm.xlu0 %542, %v165_v6   ;;  %v552_v10 = vld [vmem:[%s715_s5] sm:$0xff]   ;;  %v554_v15 = vld [vmem:[%s716_s3 + $0x8] sm:$0xff]   ;;  %v556_v18 = vld [vmem:[%s716_s3 + $0x10] sm:$0xff]  }
   0x6   :  { %v169_v12 = vld [vmem:[%s714_s1 + $0x20] sm:$0xff]  ;;  %521 = vmatprep.subr.bf16.mxu1 %v552_v10  ;;  %v171_v19 = vld [vmem:[%s714_s1 + $0x30] sm:$0xff]  ;;  %v172_v20 = vld [vmem:[%s714_s1 + $0x38] sm:$0xff] }
   0x7   :  { %508 = vmatpush3.bf16.msra.mxu0 %v545_v2  ;;  %v553_v14 = vld [vmem:[%s716_s3] sm:$0xff]   ;;  %522 = vmatpush3.bf16.msra.mxu1 %v552_v10  ;;  %v551_v21 = vld [vmem:[%s713_s0 + $0x18] sm:$0xff]  }
   0x8   :  { %509 = vmatprep.subr.bf16.mxu0 %v546_v3  ;;  %190 = vperm.xlu1 %543, %v168_v9   ;;  %v555_v16 = vld [vmem:[%s717_s4] sm:$0xff]   ;;  %v557_v22 = vld [vmem:[%s716_s3 + $0x18] sm:$0xff]  }
   0x9   :  { %180 = vperm.xlu0 %542, %v166_v8   ;;  %523 = vmatprep.mubr.msk.bf16.mxu1 %vm263_vm1, %v553_v14  ;;  %v486_v60 = vld [vmem:[%s718_s6] ss:$0 sm:$0xff] }
   0xa   :  { %531 = vmatprep.subr.bf16.mxu1 %v555_v16  ;;  %524 = vmatmul.mubr.msk.bf16.vlgmr.msra.gmra.mxu1 %vm263_vm1, %v554_v15 }
   0xb   :  { %510 = vmatpush3.bf16.msra.mxu0 %v546_v3  ;;  %532 = vmatpush3.bf16.msra.mxu1 %v555_v16 }
   0xc   :  { %511 = vmatprep.subr.bf16.mxu0 %v547_v5  ;;  %200 = vperm.xlu1 %543, %v170_v13  }
   0xd   :  { %195 = vperm.xlu0 %542, %v169_v12   ;;  %527 = vmatprep.mubr.msk.bf16.mxu1 %vm263_vm1, %v556_v18 }
   0xf   :  { %512 = vmatpush3.bf16.msra.mxu0 %v547_v5 }
  0x10   :  { %210 = vperm.xlu1 %543, %v172_v20  }
  0x11   :  { %205 = vperm.xlu0 %542, %v171_v19  }
  0x12   :  { %514 = vmatmul.mubr.msk.bf16.vlgmr.msra.gmra.mxu0 %vm87_vm0, %v549_v11  ;;  %528 = vmatmul.mubr.msk.bf16.gmra.mxu1 %vm263_vm1, %v557_v22 }
  0x13   :  { %517 = vmatprep.mubr.msk.bf16.mxu0 %vm87_vm0, %v550_v17 }
  0x1a   :  { %518 = vmatmul.mubr.msk.bf16.gmra.mxu0 %vm87_vm0, %v551_v21 }
  0x7f   :  { %v186_v23 = vpop.permute.xlu1 %185 }
  0x80   :  { %v176_v24 = vpop.permute.xlu0 %175 }
  0x83   :  { %v191_v26 = vpop.permute.xlu1 %190 }
  0x84   :  { %v181_v28 = vpop.permute.xlu0 %180 }
  0x87   :  { %v201_v32 = vpop.permute.xlu1 %200 }
  0x88   :  { %v196_v37 = vpop.permute.xlu0 %195 }
  0x8b   :  { %v211_v42 = vpop.permute.xlu1 %210 }
  0x8c   :  { %v206_v45 = vpop.permute.xlu0 %205 }
  0xca   :  { %v525_v51 = vpop.f32.mrf.mxu1 }
  0xcc   :  { %v310_v52 = vpop.f32.mrf.mxu1 }
  0xce   :  { %v526_v53 = vpop.f32.mrf.mxu1 }
  0xd0   :  { %v313_v54 = vpop.f32.mrf.mxu1 }
  0xd2   :  { %v515_v25 = vpop.f32.mrf.mxu0  ;;  %v529_v55 = vpop.f32.mrf.mxu1 }
  0xd3   :  { %v215_v35 = vmul.f32 %v515_v25, %v186_v23 }
  0xd4   :  { %v134_v27 = vpop.f32.mrf.mxu0  ;;  %v326_v56 = vpop.f32.mrf.mxu1 }
  0xd5   :  { %v213_v33 = vmul.f32 %v176_v24, %v134_v27 }
  0xd6   :  { %v516_v29 = vpop.f32.mrf.mxu0  ;;  %v530_v57 = vpop.f32.mrf.mxu1 }
  0xd7   :  { %v216_v30 = vmul.f32 %v516_v29, %v191_v26 }
  0xd8   :  { %v137_v31 = vpop.f32.mrf.mxu0  ;;  %v329_v58 = vpop.f32.mrf.mxu1 }
  0xd9   :  { %v214_v34 = vmul.f32 %v181_v28, %v137_v31  ;;  %v222_v39 = vpack.c.bf16 %v216_v30, %v215_v35 }
  0xda   :  { %v519_v36 = vpop.f32.mrf.mxu0 }
  0xdb   :  { %v221_v38 = vpack.c.bf16 %v214_v34, %v213_v33  ;;  %v219_v48 = vmul.f32 %v519_v36, %v206_v45 }
  0xdc   :  { %v150_v40 = vpop.f32.mrf.mxu0 }
  0xdd   :  { %533 = vmatprep.mubr.msk.bf16.mxu1 %vm263_vm1, %v221_v38  ;;  %v217_v46 = vmul.f32 %v196_v37, %v150_v40 }
  0xde   :  { %v520_v41 = vpop.f32.mrf.mxu0  ;;  %534 = vmatmul.mubr.msk.bf16.vlgmr.msra.gmra.mxu1 %vm263_vm1, %v222_v39 }
  0xdf   :  { %v220_v43 = vmul.f32 %v520_v41, %v211_v42 }
  0xe0   :  { %v153_v44 = vpop.f32.mrf.mxu0 }
  0xe1   :  { %v218_v47 = vmul.f32 %v201_v32, %v153_v44  ;;  %v224_v50 = vpack.c.bf16 %v220_v43, %v219_v48 }
  0xe3   :  { %v223_v49 = vpack.c.bf16 %v218_v47, %v217_v46 }
  0xe5   :  { %537 = vmatprep.mubr.msk.bf16.mxu1 %vm263_vm1, %v223_v49 }
  0xe6   :  { %538 = vmatmul.mubr.msk.bf16.gmra.mxu1 %vm263_vm1, %v224_v50 }
 0x19e   :  { %v535_v59 = vpop.f32.mrf.mxu1 }
 0x19f   :  { %v402_v61 = vadd.f32 %v535_v59, %v525_v51 }
 0x1a0   :  { %v393_v62 = vpop.f32.mrf.mxu1 }
 0x1a1   :  { %v433_v63 = vadd.f32 %v486_v60, %v402_v61  ;;  %v394_v0 = vadd.f32 %v393_v62, %v310_v52 }
 0x1a2   :  { %v536_v1 = vpop.f32.mrf.mxu1 }
 0x1a3   :  { %v441_v2 = vmax.f32 %v433_v63, 0.0  ;;  %v431_v3 = vadd.f32 %v486_v60, %v394_v0  ;;  %v405_v4 = vadd.f32 %v536_v1, %v526_v53 }
 0x1a4   :  { %v396_v5 = vpop.f32.mrf.mxu1 }
 0x1a5   :  { %450 = vst.msk [vmem:[%s719_s7 + $0x10] sm:$0xff] %vm447_vm2, %v441_v2  ;;  %v439_v6 = vmax.f32 %v431_v3, 0.0  ;;  %v434_v7 = vadd.f32 %v486_v60, %v405_v4  ;;  %v397_v8 = vadd.f32 %v396_v5, %v313_v54 }
 0x1a6   :  { %v539_v9 = vpop.f32.mrf.mxu1 }
 0x1a7   :  { %448 = vst.msk [vmem:[%s719_s7] sm:$0xff] %vm447_vm2, %v439_v6  ;;  %v442_v10 = vmax.f32 %v434_v7, 0.0  ;;  %v432_v11 = vadd.f32 %v486_v60, %v397_v8  ;;  %v418_v12 = vadd.f32 %v539_v9, %v529_v55 }
 0x1a8   :  { %v409_v13 = vpop.f32.mrf.mxu1 }
 0x1a9   :  { %451 = vst.msk [vmem:[%s719_s7 + $0x18] sm:$0xff] %vm447_vm2, %v442_v10  ;;  %v440_v14 = vmax.f32 %v432_v11, 0.0  ;;  %v437_v15 = vadd.f32 %v486_v60, %v418_v12  ;;  %v410_v16 = vadd.f32 %v409_v13, %v326_v56 }
 0x1aa   :  { %v540_v17 = vpop.f32.mrf.mxu1 }
 0x1ab   :  { %449 = vst.msk [vmem:[%s719_s7 + $0x8] sm:$0xff] %vm447_vm2, %v440_v14  ;;  %v445_v18 = vmax.f32 %v437_v15, 0.0  ;;  %v435_v19 = vadd.f32 %v486_v60, %v410_v16  ;;  %v421_v20 = vadd.f32 %v540_v17, %v530_v57 }
 0x1ac   :  { %v412_v21 = vpop.f32.mrf.mxu1 }
 0x1ad   :  { %454 = vst.msk [vmem:[%s719_s7 + $0x30] sm:$0xff] %vm447_vm2, %v445_v18  ;;  %v443_v22 = vmax.f32 %v435_v19, 0.0  ;;  %v438_v23 = vadd.f32 %v486_v60, %v421_v20  ;;  %v413_v24 = vadd.f32 %v412_v21, %v329_v58 }
 0x1af   :  { %452 = vst.msk [vmem:[%s719_s7 + $0x20] sm:$0xff] %vm447_vm2, %v443_v22  ;;  %v446_v25 = vmax.f32 %v438_v23, 0.0  ;;  %v436_v26 = vadd.f32 %v486_v60, %v413_v24 }
 0x1b1   :  { %455 = vst.msk [vmem:[%s719_s7 + $0x38] sm:$0xff] %vm447_vm2, %v446_v25  ;;  %v444_v27 = vmax.f32 %v436_v26, 0.0 }
 0x1b3   :  { %453 = vst.msk [vmem:[%s719_s7 + $0x28] sm:$0xff] %vm447_vm2, %v444_v27 }

// kernel: sage_onehot_mlp.4
= control target key start
LH: loop header
LB: loop body
LE: loop exit
PB: predicated region body
PF: predicated region fallthrough
CT: control target
= control target key end

     0   :  { %v583_v1 = vmov 0   ;;  %vm87_vm0 = vcmask 523264   ;;  %vm273_vm1 = vcmask 261120   ;;  %s743_s2 = inlined_call_operand.vmem [shape: bf16[64,32], index: 2, kind: input, shape index: {}, may-alias: {2,3}]   ;;  %s744_s0 = inlined_call_operand.vmem [shape: bf16[64,64], index: 0, kind: input, shape index: {}]   ;;  %s745_s1 = inlined_call_operand.vmem [shape: f32[64,1], index: 1, kind: input, shape index: {}]   ;;  %s746_s5 = inlined_call_operand.vmem [shape: bf16[32,32], index: 5, kind: input, shape index: {}]   ;;  %s747_s3 = inlined_call_operand.vmem [shape: bf16[64,32], index: 3, kind: input, shape index: {}, may-alias: {2,3}]   ;;  %s748_s4 = inlined_call_operand.vmem [shape: bf16[32,32], index: 4, kind: input, shape index: {}]   ;;  %s749_s6 = inlined_call_operand.vmem [shape: f32[1,32], index: 6, kind: input, shape index: {}]   ;;  %s750_s7 = inlined_call_operand.vmem [shape: f32[64,32], index: 7, kind: output, shape index: {}]  }
   0x1   :  { %v567_v0 = vld [vmem:[%s743_s2 + $0x18] sm:$0xff]   ;;  %565 = vset.pattern.permute.xlu0 %v583_v1  ;;  %566 = vset.pattern.permute.xlu1 %v583_v1  ;;  %v568_v2 = vld [vmem:[%s743_s2 + $0x10] sm:$0xff]   ;;  %v569_v3 = vld [vmem:[%s743_s2 + $0x8] sm:$0xff]  }
   0x2   :  { %524 = vmatprep.subr.bf16.mxu0 %v567_v0  ;;  %v571_v4 = vld [vmem:[%s744_s0] sm:$0xff]   ;;  %v167_v7 = vld [vmem:[%s745_s1 + $0x10] sm:$0xff]  ;;  %v166_v8 = vld [vmem:[%s745_s1 + $0x8] sm:$0xff] }
   0x3   :  { %525 = vmatpush3.bf16.msra.mxu0 %v567_v0  ;;  %532 = vmatprep.mubr.msk.bf16.mxu0 %vm87_vm0, %v571_v4  ;;  %v570_v5 = vld [vmem:[%s743_s2] sm:$0xff]   ;;  %v168_v9 = vld [vmem:[%s745_s1 + $0x18] sm:$0xff]  ;;  %v575_v10 = vld [vmem:[%s746_s5 + $0x8] sm:$0xff]  }
   0x4   :  { %526 = vmatprep.subr.bf16.mxu0 %v568_v2  ;;  %v165_v6 = vld [vmem:[%s745_s1] sm:$0xff]  ;;  %185 = vperm.xlu1 %566, %v167_v7   ;;  %v572_v11 = vld [vmem:[%s744_s0 + $0x8] sm:$0xff]   ;;  %v573_v16 = vld [vmem:[%s744_s0 + $0x10] sm:$0xff]  }
   0x5   :  { %175 = vperm.xlu0 %565, %v165_v6   ;;  %v169_v12 = vld [vmem:[%s745_s1 + $0x20] sm:$0xff]  ;;  %v170_v15 = vld [vmem:[%s745_s1 + $0x28] sm:$0xff]  ;;  %540 = vmatprep.subr.bf16.mxu1 %v575_v10  ;;  %v171_v18 = vld [vmem:[%s745_s1 + $0x30] sm:$0xff] }
   0x6   :  { %v576_v13 = vld [vmem:[%s746_s5] sm:$0xff]   ;;  %541 = vmatpush3.bf16.msra.mxu1 %v575_v10  ;;  %v579_v17 = vld [vmem:[%s748_s4 + $0x8] sm:$0xff]   ;;  %v172_v19 = vld [vmem:[%s745_s1 + $0x38] sm:$0xff] }
   0x7   :  { %527 = vmatpush3.bf16.msra.mxu0 %v568_v2  ;;  %v577_v14 = vld [vmem:[%s747_s3] sm:$0xff]   ;;  %542 = vmatprep.subr.bf16.mxu1 %v576_v13  ;;  %v578_v20 = vld [vmem:[%s747_s3 + $0x8] sm:$0xff]   ;;  %v580_v21 = vld [vmem:[%s747_s3 + $0x10] sm:$0xff]  }
   0x8   :  { %528 = vmatprep.subr.bf16.mxu0 %v569_v3  ;;  %190 = vperm.xlu1 %566, %v168_v9   ;;  %v574_v22 = vld [vmem:[%s744_s0 + $0x18] sm:$0xff]   ;;  %v582_v24 = vld [vmem:[%s748_s4] sm:$0xff]  }
   0x9   :  { %180 = vperm.xlu0 %565, %v166_v8   ;;  %544 = vmatprep.mubr.msk.bf16.mxu1 %vm273_vm1, %v577_v14  ;;  %v581_v23 = vld [vmem:[%s747_s3 + $0x18] sm:$0xff]   ;;  %v503_v62 = vld [vmem:[%s749_s6] ss:$0 sm:$0xff] }
   0xa   :  { %543 = vmatpush3.bf16.msra.mxu1 %v576_v13 }
   0xb   :  { %529 = vmatpush3.bf16.msra.mxu0 %v569_v3  ;;  %552 = vmatprep.subr.bf16.mxu1 %v579_v17 }
   0xc   :  { %530 = vmatprep.subr.bf16.mxu0 %v570_v5  ;;  %200 = vperm.xlu1 %566, %v170_v15  }
   0xd   :  { %195 = vperm.xlu0 %565, %v169_v12   ;;  %545 = vmatmul.mubr.msk.bf16.vlgmr.msra.gmra.mxu1 %vm273_vm1, %v578_v20 }
   0xe   :  { %553 = vmatpush3.bf16.msra.mxu1 %v579_v17  ;;  %548 = vmatprep.mubr.msk.bf16.mxu1 %vm273_vm1, %v580_v21 }
   0xf   :  { %531 = vmatpush3.bf16.msra.mxu0 %v570_v5  ;;  %554 = vmatprep.subr.bf16.mxu1 %v582_v24 }
  0x10   :  { %210 = vperm.xlu1 %566, %v172_v19  }
  0x11   :  { %205 = vperm.xlu0 %565, %v171_v18  }
  0x12   :  { %533 = vmatmul.mubr.msk.bf16.vlgmr.msra.gmra.mxu0 %vm87_vm0, %v572_v11  ;;  %555 = vmatpush3.bf16.msra.mxu1 %v582_v24 }
  0x13   :  { %536 = vmatprep.mubr.msk.bf16.mxu0 %vm87_vm0, %v573_v16 }
  0x15   :  { %549 = vmatmul.mubr.msk.bf16.gmra.mxu1 %vm273_vm1, %v581_v23 }
  0x1a   :  { %537 = vmatmul.mubr.msk.bf16.gmra.mxu0 %vm87_vm0, %v574_v22 }
  0x7f   :  { %v186_v25 = vpop.permute.xlu1 %185 }
  0x80   :  { %v176_v26 = vpop.permute.xlu0 %175 }
  0x83   :  { %v191_v28 = vpop.permute.xlu1 %190 }
  0x84   :  { %v181_v30 = vpop.permute.xlu0 %180 }
  0x87   :  { %v201_v34 = vpop.permute.xlu1 %200 }
  0x88   :  { %v196_v39 = vpop.permute.xlu0 %195 }
  0x8b   :  { %v211_v44 = vpop.permute.xlu1 %210 }
  0x8c   :  { %v206_v47 = vpop.permute.xlu0 %205 }
  0xcd   :  { %v546_v53 = vpop.f32.mrf.mxu1 }
  0xcf   :  { %v320_v54 = vpop.f32.mrf.mxu1 }
  0xd1   :  { %v547_v55 = vpop.f32.mrf.mxu1 }
  0xd2   :  { %v534_v27 = vpop.f32.mrf.mxu0 }
  0xd3   :  { %v215_v37 = vmul.f32 %v534_v27, %v186_v25  ;;  %v323_v56 = vpop.f32.mrf.mxu1 }
  0xd4   :  { %v134_v29 = vpop.f32.mrf.mxu0 }
  0xd5   :  { %v213_v35 = vmul.f32 %v176_v26, %v134_v29  ;;  %v550_v57 = vpop.f32.mrf.mxu1 }
  0xd6   :  { %v535_v31 = vpop.f32.mrf.mxu0 }
  0xd7   :  { %v216_v32 = vmul.f32 %v535_v31, %v191_v28  ;;  %v336_v58 = vpop.f32.mrf.mxu1 }
  0xd8   :  { %v137_v33 = vpop.f32.mrf.mxu0 }
  0xd9   :  { %v214_v36 = vmul.f32 %v181_v30, %v137_v33  ;;  %v222_v41 = vpack.c.bf16 %v216_v32, %v215_v37  ;;  %v551_v59 = vpop.f32.mrf.mxu1 }
  0xda   :  { %v538_v38 = vpop.f32.mrf.mxu0 }
  0xdb   :  { %v221_v40 = vpack.c.bf16 %v214_v36, %v213_v35  ;;  %v219_v50 = vmul.f32 %v538_v38, %v206_v47  ;;  %v339_v60 = vpop.f32.mrf.mxu1 }
  0xdc   :  { %v150_v42 = vpop.f32.mrf.mxu0 }
  0xdd   :  { %556 = vmatprep.mubr.msk.bf16.mxu1 %vm273_vm1, %v221_v40  ;;  %v217_v48 = vmul.f32 %v196_v39, %v150_v42 }
  0xde   :  { %v539_v43 = vpop.f32.mrf.mxu0  ;;  %557 = vmatmul.mubr.msk.bf16.vlgmr.msra.gmra.mxu1 %vm273_vm1, %v222_v41 }
  0xdf   :  { %v220_v45 = vmul.f32 %v539_v43, %v211_v44 }
  0xe0   :  { %v153_v46 = vpop.f32.mrf.mxu0 }
  0xe1   :  { %v218_v49 = vmul.f32 %v201_v34, %v153_v46  ;;  %v224_v52 = vpack.c.bf16 %v220_v45, %v219_v50 }
  0xe3   :  { %v223_v51 = vpack.c.bf16 %v218_v49, %v217_v48 }
  0xe5   :  { %560 = vmatprep.mubr.msk.bf16.mxu1 %vm273_vm1, %v223_v51 }
  0xe6   :  { %561 = vmatmul.mubr.msk.bf16.gmra.mxu1 %vm273_vm1, %v224_v52 }
 0x19e   :  { %v558_v61 = vpop.f32.mrf.mxu1 }
 0x19f   :  { %v418_v63 = vadd.f32 %v558_v61, %v546_v53 }
 0x1a0   :  { %v409_v0 = vpop.f32.mrf.mxu1 }
 0x1a1   :  { %v449_v1 = vadd.f32 %v503_v62, %v418_v63  ;;  %v410_v2 = vadd.f32 %v409_v0, %v320_v54 }
 0x1a2   :  { %v559_v3 = vpop.f32.mrf.mxu1 }
 0x1a3   :  { %v457_v4 = vmax.f32 %v449_v1, 0.0  ;;  %v447_v5 = vadd.f32 %v503_v62, %v410_v2  ;;  %v421_v6 = vadd.f32 %v559_v3, %v547_v55 }
 0x1a4   :  { %v412_v7 = vpop.f32.mrf.mxu1 }
 0x1a5   :  { %465 = vst.msk [vmem:[%s750_s7 + $0x10] sm:$0xff] %vm273_vm1, %v457_v4  ;;  %v455_v8 = vmax.f32 %v447_v5, 0.0  ;;  %v450_v9 = vadd.f32 %v503_v62, %v421_v6  ;;  %v413_v10 = vadd.f32 %v412_v7, %v323_v56 }
 0x1a6   :  { %v562_v11 = vpop.f32.mrf.mxu1 }
 0x1a7   :  { %463 = vst.msk [vmem:[%s750_s7] sm:$0xff] %vm273_vm1, %v455_v8  ;;  %v458_v12 = vmax.f32 %v450_v9, 0.0  ;;  %v448_v13 = vadd.f32 %v503_v62, %v413_v10  ;;  %v434_v14 = vadd.f32 %v562_v11, %v550_v57 }
 0x1a8   :  { %v425_v15 = vpop.f32.mrf.mxu1 }
 0x1a9   :  { %466 = vst.msk [vmem:[%s750_s7 + $0x18] sm:$0xff] %vm273_vm1, %v458_v12  ;;  %v456_v16 = vmax.f32 %v448_v13, 0.0  ;;  %v453_v17 = vadd.f32 %v503_v62, %v434_v14  ;;  %v426_v18 = vadd.f32 %v425_v15, %v336_v58 }
 0x1aa   :  { %v563_v19 = vpop.f32.mrf.mxu1 }
 0x1ab   :  { %464 = vst.msk [vmem:[%s750_s7 + $0x8] sm:$0xff] %vm273_vm1, %v456_v16  ;;  %v461_v20 = vmax.f32 %v453_v17, 0.0  ;;  %v451_v21 = vadd.f32 %v503_v62, %v426_v18  ;;  %v437_v22 = vadd.f32 %v563_v19, %v551_v59 }
 0x1ac   :  { %v428_v23 = vpop.f32.mrf.mxu1 }
 0x1ad   :  { %469 = vst.msk [vmem:[%s750_s7 + $0x30] sm:$0xff] %vm273_vm1, %v461_v20  ;;  %v459_v24 = vmax.f32 %v451_v21, 0.0  ;;  %v454_v25 = vadd.f32 %v503_v62, %v437_v22  ;;  %v429_v26 = vadd.f32 %v428_v23, %v339_v60 }
 0x1af   :  { %467 = vst.msk [vmem:[%s750_s7 + $0x20] sm:$0xff] %vm273_vm1, %v459_v24  ;;  %v462_v27 = vmax.f32 %v454_v25, 0.0  ;;  %v452_v28 = vadd.f32 %v503_v62, %v429_v26 }
 0x1b1   :  { %470 = vst.msk [vmem:[%s750_s7 + $0x38] sm:$0xff] %vm273_vm1, %v462_v27  ;;  %v460_v29 = vmax.f32 %v452_v28, 0.0 }
 0x1b3   :  { %468 = vst.msk [vmem:[%s750_s7 + $0x28] sm:$0xff] %vm273_vm1, %v460_v29 }

// kernel: sage_onehot_mlp.5
= control target key start
LH: loop header
LB: loop body
LE: loop exit
PB: predicated region body
PF: predicated region fallthrough
CT: control target
= control target key end

     0   :  { %vm92_vm0 = vcmask 261120   ;;  %vm405_vm1 = vcmask 523264   ;;  %vm566_vm2 = vcmask 7168   ;;  %s859_s1 = inlined_call_operand.vmem [shape: bf16[32,128], index: 1, kind: input, shape index: {}]   ;;  %s860_s0 = inlined_call_operand.vmem [shape: bf16[64,32], index: 0, kind: input, shape index: {}]   ;;  %s861_s5 = inlined_call_operand.vmem [shape: bf16[128,64], index: 5, kind: input, shape index: {}]   ;;  %s862_s2 = inlined_call_operand.vmem [shape: f32[1,128], index: 2, kind: input, shape index: {}]   ;;  %s863_s3 = inlined_call_operand.vmem [shape: f32[1,128], index: 3, kind: input, shape index: {}]   ;;  %s864_s4 = inlined_call_operand.vmem [shape: f32[1,128], index: 4, kind: input, shape index: {}]   ;;  %s865_s10 = inlined_call_operand.<no memory space> [shape: f32[1,1], index: 10, kind: input, shape index: {}]   ;;  %s866_s6 = inlined_call_operand.vmem [shape: f32[1,64], index: 6, kind: input, shape index: {}]   ;;  %s867_s7 = inlined_call_operand.vmem [shape: f32[1,64], index: 7, kind: input, shape index: {}]   ;;  %s868_s8 = inlined_call_operand.vmem [shape: f32[1,64], index: 8, kind: input, shape index: {}]   ;;  %s869_s9 = inlined_call_operand.vmem [shape: f32[1,64], index: 9, kind: input, shape index: {}]   ;;  %s870_s11 = inlined_call_operand.vmem [shape: f32[64,1], index: 11, kind: output, shape index: {}]  }
   0x1   :  { %v659_v0 = vld [vmem:[%s859_s1 + $0x8] sm:$0xff]   ;;  %v660_v1 = vld [vmem:[%s859_s1] sm:$0xff]   ;;  %v663_v4 = vld [vmem:[%s860_s0 + $0x10] sm:$0xff]  }
   0x2   :  { %623 = vmatprep.subr.bf16.mxu0 %v659_v0  ;;  %v661_v2 = vld [vmem:[%s860_s0] sm:$0xff]   ;;  %v662_v3 = vld [vmem:[%s860_s0 + $0x8] sm:$0xff]   ;;  %v664_v5 = vld [vmem:[%s860_s0 + $0x18] sm:$0xff]  }
   0x3   :  { %624 = vmatpush3.bf16.msra.mxu0 %v659_v0  ;;  %627 = vmatprep.mubr.msk.bf16.mxu0 %vm92_vm0, %v661_v2  ;;  %v665_v6 = vld [vmem:[%s861_s5 + $0x38] sm:$0xff]   ;;  %v666_v7 = vld [vmem:[%s861_s5 + $0x30] sm:$0xff]   ;;  %v667_v8 = vld [vmem:[%s861_s5 + $0x28] sm:$0xff]  }
   0x4   :  { %625 = vmatprep.subr.bf16.mxu0 %v660_v1  ;;  %635 = vmatprep.subr.bf16.mxu1 %v665_v6  ;;  %v668_v9 = vld [vmem:[%s861_s5 + $0x20] sm:$0xff]   ;;  %v669_v10 = vld [vmem:[%s861_s5 + $0x18] sm:$0xff]   ;;  %v670_v11 = vld [vmem:[%s861_s5 + $0x10] sm:$0xff]  }
   0x5   :  { %636 = vmatpush3.bf16.msra.mxu1 %v665_v6  ;;  %v671_v12 = vld [vmem:[%s861_s5 + $0x8] sm:$0xff]   ;;  %v672_v13 = vld [vmem:[%s861_s5] sm:$0xff]  }
   0x6   :  { %637 = vmatprep.subr.bf16.mxu1 %v666_v7  ;;  %v579_v17 = vld [vmem:[%s862_s2] ss:$0 sm:$0xff] }
   0x7   :  { %626 = vmatpush3.bf16.msra.mxu0 %v660_v1 }
   0x9   :  { %638 = vmatpush3.bf16.msra.mxu1 %v666_v7 }
   0xa   :  { %628 = vmatmul.mubr.msk.bf16.vlgmr.msra.gmra.mxu0 %vm92_vm0, %v662_v3  ;;  %639 = vmatprep.subr.bf16.mxu1 %v667_v8 }
   0xb   :  { %631 = vmatprep.mubr.msk.bf16.mxu0 %vm92_vm0, %v663_v4 }
   0xd   :  { %640 = vmatpush3.bf16.msra.mxu1 %v667_v8 }
   0xe   :  { %641 = vmatprep.subr.bf16.mxu1 %v668_v9 }
  0x11   :  { %642 = vmatpush3.bf16.msra.mxu1 %v668_v9 }
  0x12   :  { %632 = vmatmul.mubr.msk.bf16.gmra.mxu0 %vm92_vm0, %v664_v5  ;;  %643 = vmatprep.subr.bf16.mxu1 %v669_v10 }
  0x15   :  { %644 = vmatpush3.bf16.msra.mxu1 %v669_v10 }
  0x16   :  { %645 = vmatprep.subr.bf16.mxu1 %v670_v11 }
  0x19   :  { %646 = vmatpush3.bf16.msra.mxu1 %v670_v11 }
  0x1a   :  { %647 = vmatprep.subr.bf16.mxu1 %v671_v12 }
  0x1d   :  { %648 = vmatpush3.bf16.msra.mxu1 %v671_v12 }
  0x1e   :  { %649 = vmatprep.subr.bf16.mxu1 %v672_v13 }
  0x21   :  { %650 = vmatpush3.bf16.msra.mxu1 %v672_v13  ;;  %v590_v13 = vld [vmem:[%s863_s3] ss:$0 sm:$0xff] }
  0xca   :  { %v629_v14 = vpop.f32.mrf.mxu0 }
  0xcb   :  { %v148_v22 = vadd.f32 %v629_v14, %v579_v17 }
  0xcc   :  { %v139_v15 = vpop.f32.mrf.mxu0 }
  0xcd   :  { %v140_v19 = vadd.f32 %v579_v17, %v139_v15 }
  0xce   :  { %v630_v16 = vpop.f32.mrf.mxu0 }
  0xcf   :  { %v151_v25 = vadd.f32 %v630_v16, %v579_v17 }
  0xd0   :  { %v142_v18 = vpop.f32.mrf.mxu0 }
  0xd1   :  { %v143_v20 = vadd.f32 %v579_v17, %v142_v18  ;;  %v591_v18 = vld [vmem:[%s864_s4] ss:$0 sm:$0xff] }
  0xd2   :  { %v633_v21 = vpop.f32.mrf.mxu0 }
  0xd3   :  { %v172_v23 = vadd.f32 %v143_v20, %v140_v19  ;;  %v164_v33 = vadd.f32 %v633_v21, %v579_v17 }
  0xd4   :  { %v155_v24 = vpop.f32.mrf.mxu0 }
  0xd5   :  { %v173_v26 = vadd.f32 %v172_v23, %v148_v22  ;;  %v156_v28 = vadd.f32 %v579_v17, %v155_v24 }
  0xd6   :  { %v634_v27 = vpop.f32.mrf.mxu0 }
  0xd7   :  { %v174_v29 = vadd.f32 %v173_v26, %v151_v25  ;;  %v167_v35 = vadd.f32 %v634_v27, %v579_v17 }
  0xd8   :  { %v158_v30 = vpop.f32.mrf.mxu0 }
  0xd9   :  { %v175_v31 = vadd.f32 %v174_v29, %v156_v28  ;;  %v159_v32 = vadd.f32 %v579_v17, %v158_v30 }
  0xdb   :  { %v176_v34 = vadd.f32 %v175_v31, %v159_v32 }
  0xdd   :  { %v177_v36 = vadd.f32 %v176_v34, %v164_v33 }
  0xdf   :  { %v178_v37 = vadd.f32 %v177_v36, %v167_v35 }
  0xe1   :  { %v179_v38 = vrot.slane %v178_v37, 4 }
  0xe3   :  { %v180_v39 = vadd.f32 %v179_v38, %v178_v37 }
  0xe5   :  { %v181_v40 = vrot.slane %v180_v39, 2 }
  0xe7   :  { %v182_v41 = vadd.f32 %v181_v40, %v180_v39 }
  0xe9   :  { %v183_v42 = vrot.slane %v182_v41, 1 }
  0xeb   :  { %v184_v43 = vadd.f32 %v183_v42, %v182_v41 }
  0xed   :  { %v186_v44 = vmul.f32 0.015625, %v184_v43 }
  0xef   :  { %v187_v45 = vsub.f32 %v140_v19, %v186_v44  ;;  %v188_v46 = vsub.f32 %v143_v20, %v186_v44  ;;  %v189_v47 = vsub.f32 %v148_v22, %v186_v44  ;;  %v190_v48 = vsub.f32 %v151_v25, %v186_v44 }
  0xf0   :  { %v191_v51 = vsub.f32 %v156_v28, %v186_v44  ;;  %v192_v54 = vsub.f32 %v159_v32, %v186_v44  ;;  %v193_v57 = vsub.f32 %v164_v33, %v186_v44  ;;  %v194_v60 = vsub.f32 %v167_v35, %v186_v44 }
  0xf1   :  { %v195_v49 = vmul.f32 %v187_v45, %v187_v45  ;;  %v196_v50 = vmul.f32 %v188_v46, %v188_v46  ;;  %v197_v52 = vmul.f32 %v189_v47, %v189_v47  ;;  %v198_v55 = vmul.f32 %v190_v48, %v190_v48 }
  0xf2   :  { %v199_v58 = vmul.f32 %v191_v51, %v191_v51  ;;  %v200_v61 = vmul.f32 %v192_v54, %v192_v54  ;;  %v201_v63 = vmul.f32 %v193_v57, %v193_v57  ;;  %v202_v1 = vmul.f32 %v194_v60, %v194_v60 }
  0xf3   :  { %v203_v53 = vadd.f32 %v196_v50, %v195_v49 }
  0xf5   :  { %v204_v56 = vadd.f32 %v203_v53, %v197_v52 }
  0xf7   :  { %v205_v59 = vadd.f32 %v204_v56, %v198_v55 }
  0xf9   :  { %v206_v62 = vadd.f32 %v205_v59, %v199_v58 }
  0xfb   :  { %v207_v0 = vadd.f32 %v206_v62, %v200_v61 }
  0xfd   :  { %v208_v2 = vadd.f32 %v207_v0, %v201_v63 }
  0xff   :  { %v209_v3 = vadd.f32 %v208_v2, %v202_v1 }
 0x101   :  { %v210_v4 = vrot.slane %v209_v3, 4 }
 0x103   :  { %v211_v5 = vadd.f32 %v210_v4, %v209_v3 }
 0x105   :  { %v212_v6 = vrot.slane %v211_v5, 2 }
 0x107   :  { %v213_v7 = vadd.f32 %v212_v6, %v211_v5 }
 0x109   :  { %v214_v8 = vrot.slane %v213_v7, 1 }
 0x10b   :  { %v215_v9 = vadd.f32 %v214_v8, %v213_v7 }
 0x10d   :  { %v216_v10 = vmul.f32 0.015625, %v215_v9 }
 0x10f   :  { %v217_v11 = vadd.f32 1e-05, %v216_v10 }
 0x111   :  { %673 = vrsqrt.f32 %v217_v11 }
 0x11e   :  { %v674_v12 = vpop.eup %673 }
 0x11f   :  { %v224_v14 = vmul.f32 %v674_v12, %v192_v54  ;;  %v219_v15 = vmul.f32 %v674_v12, %v187_v45  ;;  %v220_v16 = vmul.f32 %v674_v12, %v188_v46  ;;  %v221_v17 = vmul.f32 %v674_v12, %v189_v47  ;;  %v592_v54 = vld [vmem:[%s866_s6] ss:$0 sm:$0xff] }
 0x120   :  { %v222_v19 = vmul.f32 %v674_v12, %v190_v48  ;;  %v223_v20 = vmul.f32 %v674_v12, %v191_v51  ;;  %v225_v21 = vmul.f32 %v674_v12, %v193_v57  ;;  %v226_v22 = vmul.f32 %v674_v12, %v194_v60 }
 0x121   :  { %v238_v23 = vmul.f32 %v590_v13, %v224_v14  ;;  %v233_v24 = vmul.f32 %v590_v13, %v219_v15  ;;  %v234_v25 = vmul.f32 %v590_v13, %v220_v16  ;;  %v235_v26 = vmul.f32 %v590_v13, %v221_v17 }
 0x122   :  { %v236_v27 = vmul.f32 %v590_v13, %v222_v19  ;;  %v237_v28 = vmul.f32 %v590_v13, %v223_v20  ;;  %v239_v35 = vmul.f32 %v590_v13, %v225_v21  ;;  %v240_v36 = vmul.f32 %v590_v13, %v226_v22 }
 0x123   :  { %v247_v29 = vadd.f32 %v591_v18, %v233_v24  ;;  %v248_v30 = vadd.f32 %v591_v18, %v234_v25  ;;  %v249_v31 = vadd.f32 %v591_v18, %v235_v26  ;;  %v252_v32 = vadd.f32 %v591_v18, %v238_v23 }
 0x124   :  { %v250_v33 = vadd.f32 %v591_v18, %v236_v27  ;;  %v251_v34 = vadd.f32 %v591_v18, %v237_v28  ;;  %v253_v45 = vadd.f32 %v591_v18, %v239_v35  ;;  %v254_v46 = vadd.f32 %v591_v18, %v240_v36 }
 0x125   :  { %v255_v37 = vmax.f32 %v247_v29, 0.0  ;;  %v256_v38 = vmax.f32 %v248_v30, 0.0  ;;  %v257_v39 = vmax.f32 %v249_v31, 0.0  ;;  %v260_v40 = vmax.f32 %v252_v32, 0.0 }
 0x126   :  { %v258_v41 = vmax.f32 %v250_v33, 0.0  ;;  %v259_v42 = vmax.f32 %v251_v34, 0.0  ;;  %v261_v48 = vmax.f32 %v253_v45, 0.0  ;;  %v262_v49 = vmax.f32 %v254_v46, 0.0 }
 0x127   :  { %v263_v43 = vpack.c.bf16 %v256_v38, %v255_v37  ;;  %v16_v51 = vstv %s865_s10 }
 0x128   :  { %v264_v44 = vpack.c.bf16 %v258_v41, %v257_v39  ;;  %v265_v47 = vpack.c.bf16 %v260_v40, %v259_v42  ;;  %v266_v50 = vpack.c.bf16 %v262_v49, %v261_v48  ;;  %17 = vst [vmem:[#allocation2] sm:$0x1] %v16_v51 }
 0x129   :  { %651 = vmatprep.mubr.bf16.mxu1 %v263_v43 }
 0x12a   :  { %652 = vmatmul.mubr.bf16.vlgmr.msra.gmra.mxu1 %v264_v44 }
 0x12b   :  { %655 = vmatprep.mubr.bf16.mxu1 %v265_v47 }
 0x132   :  { %656 = vmatmul.mubr.bf16.gmra.mxu1 %v266_v50 }
 0x1ea   :  { %v653_v52 = vpop.f32.mrf.mxu1 }
 0x1eb   :  { %v381_v58 = vadd.f32 %v653_v52, %v592_v54 }
 0x1ec   :  { %v372_v53 = vpop.f32.mrf.mxu1 }
 0x1ed   :  { %v373_v56 = vadd.f32 %v592_v54, %v372_v53  ;;  %v409_v2 = vsel %vm405_vm1, %v381_v58, 0.0 }
 0x1ee   :  { %v654_v55 = vpop.f32.mrf.mxu1 }
 0x1ef   :  { %v406_v61 = vsel %vm405_vm1, %v373_v56, 0.0  ;;  %v384_v62 = vadd.f32 %v654_v55, %v592_v54 }
 0x1f0   :  { %v375_v57 = vpop.f32.mrf.mxu1 }
 0x1f1   :  { %v376_v59 = vadd.f32 %v592_v54, %v375_v57  ;;  %v411_v6 = vsel %vm405_vm1, %v384_v62, 0.0 }
 0x1f2   :  { %v657_v60 = vpop.f32.mrf.mxu1 }
 0x1f3   :  { %v407_v63 = vsel %vm405_vm1, %v376_v59, 0.0  ;;  %v397_v9 = vadd.f32 %v657_v60, %v592_v54 }
 0x1f4   :  { %v408_v0 = vadd.f32 %v407_v63, %v406_v61  ;;  %v388_v1 = vpop.f32.mrf.mxu1 }
 0x1f5   :  { %v389_v3 = vadd.f32 %v592_v54, %v388_v1  ;;  %v417_v16 = vsel %vm405_vm1, %v397_v9, 0.0 }
 0x1f6   :  { %v410_v4 = vadd.f32 %v409_v2, %v408_v0  ;;  %v658_v5 = vpop.f32.mrf.mxu1 }
 0x1f7   :  { %v413_v10 = vsel %vm405_vm1, %v389_v3, 0.0  ;;  %v400_v13 = vadd.f32 %v658_v5, %v592_v54 }
 0x1f8   :  { %v412_v7 = vadd.f32 %v411_v6, %v410_v4  ;;  %v391_v8 = vpop.f32.mrf.mxu1 }
 0x1f9   :  { %v392_v11 = vadd.f32 %v592_v54, %v391_v8  ;;  %v419_v18 = vsel %vm405_vm1, %v400_v13, 0.0  ;;  %v602_v8 = vld [vmem:[%s868_s8] ss:$0 sm:$0xff] }
 0x1fa   :  { %v414_v12 = vadd.f32 %v413_v10, %v412_v7 }
 0x1fb   :  { %v415_v14 = vsel %vm405_vm1, %v392_v11, 0.0 }
 0x1fc   :  { %v416_v15 = vadd.f32 %v415_v14, %v414_v12 }
 0x1fe   :  { %v418_v17 = vadd.f32 %v417_v16, %v416_v15 }
 0x200   :  { %v420_v19 = vadd.f32 %v419_v18, %v418_v17 }
 0x202   :  { %v421_v20 = vrot.slane %v420_v19, 4 }
 0x204   :  { %v422_v21 = vadd.f32 %v421_v20, %v420_v19 }
 0x206   :  { %v423_v22 = vrot.slane %v422_v21, 2 }
 0x208   :  { %v424_v23 = vadd.f32 %v423_v22, %v422_v21 }
 0x20a   :  { %v425_v24 = vrot.slane %v424_v23, 1 }
 0x20c   :  { %v426_v25 = vadd.f32 %v425_v24, %v424_v23  ;;  %v603_v23 = vld [vmem:[%s869_s9] ss:$0 sm:$0xff] }
 0x20e   :  { %v427_v26 = vmul.f32 0.015625, %v426_v25 }
 0x210   :  { %v428_v27 = vsub.f32 %v373_v56, %v427_v26  ;;  %v429_v28 = vsub.f32 %v376_v59, %v427_v26  ;;  %v430_v29 = vsub.f32 %v381_v58, %v427_v26  ;;  %v431_v30 = vsub.f32 %v384_v62, %v427_v26 }
 0x211   :  { %v432_v31 = vsub.f32 %v389_v3, %v427_v26  ;;  %v433_v35 = vsub.f32 %v392_v11, %v427_v26  ;;  %v434_v40 = vsub.f32 %v397_v9, %v427_v26  ;;  %v435_v44 = vsub.f32 %v400_v13, %v427_v26  ;;  %v601_v3 = vld [vmem:[%s867_s7] ss:$0 sm:$0xff] }
 0x212   :  { %v436_v32 = vmul.f32 %v428_v27, %v428_v27  ;;  %v437_v33 = vmul.f32 %v429_v28, %v429_v28  ;;  %v438_v34 = vmul.f32 %v430_v29, %v430_v29  ;;  %v439_v36 = vmul.f32 %v431_v30, %v431_v30 }
 0x213   :  { %v440_v41 = vmul.f32 %v432_v31, %v432_v31  ;;  %v441_v45 = vmul.f32 %v433_v35, %v433_v35  ;;  %v442_v48 = vmul.f32 %v434_v40, %v434_v40  ;;  %v443_v51 = vmul.f32 %v435_v44, %v435_v44 }
 0x214   :  { %v444_v37 = vsel %vm405_vm1, %v436_v32, 0.0  ;;  %v445_v38 = vsel %vm405_vm1, %v437_v33, 0.0  ;;  %v447_v42 = vsel %vm405_vm1, %v438_v34, 0.0  ;;  %v449_v46 = vsel %vm405_vm1, %v439_v36, 0.0 }
 0x215   :  { %v446_v39 = vadd.f32 %v445_v38, %v444_v37  ;;  %v451_v49 = vsel %vm405_vm1, %v440_v41, 0.0  ;;  %v453_v52 = vsel %vm405_vm1, %v441_v45, 0.0  ;;  %v455_v54 = vsel %vm405_vm1, %v442_v48, 0.0 }
 0x216   :  { %v457_v56 = vsel %vm405_vm1, %v443_v51, 0.0 }
 0x217   :  { %v448_v43 = vadd.f32 %v447_v42, %v446_v39 }
 0x219   :  { %v450_v47 = vadd.f32 %v449_v46, %v448_v43 }
 0x21b   :  { %v452_v50 = vadd.f32 %v451_v49, %v450_v47 }
 0x21d   :  { %v454_v53 = vadd.f32 %v453_v52, %v452_v50 }
 0x21f   :  { %v456_v55 = vadd.f32 %v455_v54, %v454_v53  ;;  %v604_v54 = vld [vmem:[#allocation2] ss:$0 sm:$0xff] }
 0x221   :  { %v458_v57 = vadd.f32 %v457_v56, %v456_v55 }
 0x223   :  { %v459_v58 = vrot.slane %v458_v57, 4 }
 0x225   :  { %v460_v59 = vadd.f32 %v459_v58, %v458_v57 }
 0x227   :  { %v461_v60 = vrot.slane %v460_v59, 2 }
 0x229   :  { %v462_v61 = vadd.f32 %v461_v60, %v460_v59 }
 0x22b   :  { %v463_v62 = vrot.slane %v462_v61, 1 }
 0x22d   :  { %v464_v63 = vadd.f32 %v463_v62, %v462_v61 }
 0x22f   :  { %v465_v0 = vmul.f32 0.015625, %v464_v63 }
 0x231   :  { %v466_v1 = vadd.f32 1e-05, %v465_v0 }
 0x233   :  { %675 = vrsqrt.f32 %v466_v1 }
 0x240   :  { %v676_v2 = vpop.eup %675 }
 0x241   :  { %v473_v4 = vmul.f32 %v676_v2, %v433_v35  ;;  %v470_v5 = vmul.f32 %v676_v2, %v430_v29  ;;  %v468_v6 = vmul.f32 %v676_v2, %v428_v27  ;;  %v471_v7 = vmul.f32 %v676_v2, %v431_v30 }
 0x242   :  { %v469_v9 = vmul.f32 %v676_v2, %v429_v28  ;;  %v472_v10 = vmul.f32 %v676_v2, %v432_v31  ;;  %v475_v11 = vmul.f32 %v676_v2, %v435_v44  ;;  %v474_v12 = vmul.f32 %v676_v2, %v434_v40 }
 0x243   :  { %v487_v13 = vmul.f32 %v601_v3, %v473_v4  ;;  %v484_v14 = vmul.f32 %v601_v3, %v470_v5  ;;  %v482_v15 = vmul.f32 %v601_v3, %v468_v6  ;;  %v485_v16 = vmul.f32 %v601_v3, %v471_v7 }
 0x244   :  { %v483_v17 = vmul.f32 %v601_v3, %v469_v9  ;;  %v486_v18 = vmul.f32 %v601_v3, %v472_v10  ;;  %v489_v22 = vmul.f32 %v601_v3, %v475_v11  ;;  %v488_v27 = vmul.f32 %v601_v3, %v474_v12 }
 0x245   :  { %v498_v19 = vadd.f32 %v602_v8, %v484_v14  ;;  %v496_v20 = vadd.f32 %v602_v8, %v482_v15  ;;  %v499_v21 = vadd.f32 %v602_v8, %v485_v16  ;;  %v501_v25 = vadd.f32 %v602_v8, %v487_v13 }
 0x246   :  { %v497_v24 = vadd.f32 %v602_v8, %v483_v17  ;;  %v500_v26 = vadd.f32 %v602_v8, %v486_v18  ;;  %v503_v36 = vadd.f32 %v602_v8, %v489_v22  ;;  %v502_v37 = vadd.f32 %v602_v8, %v488_v27 }
 0x247   :  { %v506_v28 = vmax.f32 %v498_v19, 0.0  ;;  %v504_v29 = vmax.f32 %v496_v20, 0.0  ;;  %v507_v30 = vmax.f32 %v499_v21, 0.0  ;;  %v509_v34 = vmax.f32 %v501_v25, 0.0 }
 0x248   :  { %v505_v31 = vmax.f32 %v497_v24, 0.0  ;;  %v508_v35 = vmax.f32 %v500_v26, 0.0  ;;  %v511_v42 = vmax.f32 %v503_v36, 0.0  ;;  %v510_v43 = vmax.f32 %v502_v37, 0.0 }
 0x249   :  { %v521_v32 = vmul.f32 %v603_v23, %v506_v28  ;;  %v519_v33 = vmul.f32 %v603_v23, %v504_v29  ;;  %v522_v40 = vmul.f32 %v603_v23, %v507_v30  ;;  %v524_v46 = vmul.f32 %v603_v23, %v509_v34 }
 0x24a   :  { %v520_v41 = vmul.f32 %v603_v23, %v505_v31  ;;  %v523_v47 = vmul.f32 %v603_v23, %v508_v35  ;;  %v526_v50 = vmul.f32 %v603_v23, %v511_v42  ;;  %v525_v51 = vmul.f32 %v603_v23, %v510_v43 }
 0x24b   :  { %v533_v38 = vsel %vm405_vm1, %v521_v32, 0.0  ;;  %v527_v39 = vsel %vm405_vm1, %v519_v33, 0.0  ;;  %v536_v44 = vsel %vm405_vm1, %v522_v40, 0.0  ;;  %v542_v48 = vsel %vm405_vm1, %v524_v46, 0.0 }
 0x24c   :  { %534 = vadd.xlane.f32.xlu1 %v533_v38  ;;  %528 = vadd.xlane.f32.xlu0 %v527_v39  ;;  %v530_v45 = vsel %vm405_vm1, %v520_v41, 0.0  ;;  %v539_v49 = vsel %vm405_vm1, %v523_v47, 0.0  ;;  %v548_v52 = vsel %vm405_vm1, %v526_v50, 0.0  ;;  %v545_v53 = vsel %vm405_vm1, %v525_v51, 0.0 }
 0x250   :  { %537 = vadd.xlane.f32.xlu1 %v536_v44  ;;  %531 = vadd.xlane.f32.xlu0 %v530_v45 }
 0x254   :  { %543 = vadd.xlane.f32.xlu1 %v542_v48  ;;  %540 = vadd.xlane.f32.xlu0 %v539_v49 }
 0x258   :  { %549 = vadd.xlane.f32.xlu1 %v548_v52  ;;  %546 = vadd.xlane.f32.xlu0 %v545_v53 }
 0x2d5   :  { %v535_v55 = vpop.xlane.xlu1 %534  ;;  %v529_v56 = vpop.xlane.xlu0 %528 }
 0x2d6   :  { %v560_v57 = vadd.f32 %v604_v54, %v535_v55  ;;  %v558_v58 = vadd.f32 %v604_v54, %v529_v56 }
 0x2d8   :  { %569 = vst.msk [vmem:[%s870_s11 + $0x10] sm:$0xff] %vm566_vm2, %v560_v57  ;;  %567 = vst.msk [vmem:[%s870_s11] sm:$0xff] %vm566_vm2, %v558_v58 }
 0x2d9   :  { %v538_v59 = vpop.xlane.xlu1 %537  ;;  %v532_v60 = vpop.xlane.xlu0 %531 }
 0x2da   :  { %v561_v61 = vadd.f32 %v604_v54, %v538_v59  ;;  %v559_v62 = vadd.f32 %v604_v54, %v532_v60 }
 0x2dc   :  { %570 = vst.msk [vmem:[%s870_s11 + $0x18] sm:$0xff] %vm566_vm2, %v561_v61  ;;  %568 = vst.msk [vmem:[%s870_s11 + $0x8] sm:$0xff] %vm566_vm2, %v559_v62 }
 0x2dd   :  { %v544_v63 = vpop.xlane.xlu1 %543  ;;  %v541_v0 = vpop.xlane.xlu0 %540 }
 0x2de   :  { %v563_v1 = vadd.f32 %v604_v54, %v544_v63  ;;  %v562_v2 = vadd.f32 %v604_v54, %v541_v0 }
 0x2e0   :  { %572 = vst.msk [vmem:[%s870_s11 + $0x28] sm:$0xff] %vm566_vm2, %v563_v1  ;;  %571 = vst.msk [vmem:[%s870_s11 + $0x20] sm:$0xff] %vm566_vm2, %v562_v2 }
 0x2e1   :  { %v550_v3 = vpop.xlane.xlu1 %549  ;;  %v547_v4 = vpop.xlane.xlu0 %546 }
 0x2e2   :  { %v565_v5 = vadd.f32 %v604_v54, %v550_v3  ;;  %v564_v6 = vadd.f32 %v604_v54, %v547_v4 }
 0x2e4   :  { %574 = vst.msk [vmem:[%s870_s11 + $0x38] sm:$0xff] %vm566_vm2, %v565_v5  ;;  %573 = vst.msk [vmem:[%s870_s11 + $0x30] sm:$0xff] %vm566_vm2, %v564_v6 }

</bundles_post_ra>
